<compile_context>
chip_gen: v6e
topology: v6e:2x2x1
jax: 0.10.0
libtpu: 0.0.40
codegen_flags: <defaults>
</compile_context>

<pallas_src>
import functools

import jax
import jax.numpy as jnp
from jax.experimental import pallas as pl
from jax.experimental.pallas import tpu as pltpu


# ---------------------------------------------------------------------------
# Kernel 1: BN1 + ReLU + 1x1 conv, with fused partial moments for BN2
# ---------------------------------------------------------------------------
def _bn_relu_conv1x1_kernel(x_ref, scale_ref, bias_ref, w_ref, o_ref, mom_ref):
    # x_ref:      (1, Cin, THW)    f32  (channels-first, spatial on lanes)
    # scale/bias: (Cin, 1)         f32  folded BN1 affine
    # w_ref:      (Cmid, Cin)      bf16 1x1 conv weight
    # o_ref:      (1, Cmid, THW)   f32  (lane-dense output)
    # mom_ref:    (1, 1, Cmid, 2)  f32  per-block [sum, sum_sq] over THW
    a = jnp.maximum(x_ref[0] * scale_ref[...] + bias_ref[...], 0.0)      # f32 elementwise
    out = jnp.dot(w_ref[...], a.astype(w_ref.dtype),
                  preferred_element_type=jnp.float32)                    # (Cmid, THW)
    o_ref[0] = out
    # Cross-lane reduces land on the XLU slot; results stay in their natural
    # (Cmid sublanes x 1 lane) layout, so the tiny moments store needs no
    # relayout.
    mom_ref[0, 0, :, 0:1] = jnp.sum(out, axis=1, keepdims=True)
    mom_ref[0, 0, :, 1:2] = jnp.sum(out * out, axis=1, keepdims=True)


def _pick_hw_tile(hw, cap=2048):
    """Largest spatial tile: whole image if small, otherwise a multiple of 128
    that divides H*W (keeps BlockSpec last-dim constraints satisfied)."""
    if hw <= cap:
        return hw
    for d in range(cap - cap % 128, 0, -128):
        if hw % d == 0:
            return d
    return hw


def bn_relu_conv1x1(x3, scale, bias, w):
    N, Cin, HW = x3.shape
    Cmid = w.shape[0]
    thw = _pick_hw_tile(HW)
    nj = HW // thw
    return pl.pallas_call(
        _bn_relu_conv1x1_kernel,
        out_shape=(
            jax.ShapeDtypeStruct((N, Cmid, HW), jnp.float32),
            jax.ShapeDtypeStruct((N, nj, Cmid, 2), jnp.float32),
        ),
        grid_spec=pltpu.PrefetchScalarGridSpec(
            num_scalar_prefetch=0,
            grid=(N, nj),
            in_specs=[
                pl.BlockSpec((1, Cin, thw), lambda n, j: (n, 0, j)),
                pl.BlockSpec((Cin, 1), lambda n, j: (0, 0)),
                pl.BlockSpec((Cin, 1), lambda n, j: (0, 0)),
                pl.BlockSpec((Cmid, Cin), lambda n, j: (0, 0)),
            ],
            out_specs=(
                pl.BlockSpec((1, Cmid, thw), lambda n, j: (n, 0, j)),
                pl.BlockSpec((1, 1, Cmid, 2), lambda n, j: (n, j, 0, 0)),
            ),
        ),
        compiler_params=pltpu.CompilerParams(
            dimension_semantics=("parallel", "parallel")),
    )(x3, scale, bias, w)


# ---------------------------------------------------------------------------
# Kernel 2: BN2 + ReLU + 3x3 conv (pad=1) as a single K = 9*Cmid matmul,
#           fused with the final channel concat (x goes into channels [0:C)).
# ---------------------------------------------------------------------------
def _bn_relu_conv3x3_concat_kernel(x_ref, a_ref, scale_ref, bias_ref, w_ref,
                                   mask_ref, o_ref, slab_ref, *, width):
    # x_ref:      (1, C, HW)        f32  original input (passthrough channels)
    # a_ref:      (1, Cmid, HW)     f32  conv1 output
    # scale/bias: (Cmid, 1)         f32  folded BN2 affine
    # w_ref:      (Cout, 9*Cmid)    bf16 conv2 weight, column = (ky*3+kx)*Cmid + ci
    # mask_ref:   (9, HW)           f32  1.0 where the shifted tap is in-bounds
    # o_ref:      (1, C+Cout, HW)   f32  fused concat output (lane-dense, NCHW)
    # slab_ref:   (9*Cmid, HW)      bf16 im2col slab (K x spatial)
    C = x_ref.shape[1]
    Cmid = a_ref.shape[1]
    Cout = w_ref.shape[0]

    # Fused torch.cat((x, out), 1): passthrough channels written directly.
    o_ref[0, 0:C, :] = x_ref[0]

    r = jnp.maximum(a_ref[0] * scale_ref[...] + bias_ref[...], 0.0)  # (Cmid, HW) f32

    t = 0
    for dy in (-1, 0, 1):
        for dx in (-1, 0, 1):
            shift = (-(dy * width + dx)) % r.shape[1]
            shifted = r if shift == 0 else pltpu.roll(r, shift, 1)
            if dy == 0 and dx == 0:
                contrib = shifted
            else:
                contrib = shifted * mask_ref[t:t + 1, :]
            slab_ref[t * Cmid:(t + 1) * Cmid, :] = contrib.astype(slab_ref.dtype)
            t += 1

    o_ref[0, C:C + Cout, :] = jnp.dot(w_ref[...], slab_ref[...],
                                      preferred_element_type=jnp.float32)


def bn_relu_conv3x3_concat(x3, out1, scale, bias, w2_mat, tap_mask, width):
    # TODO(synk): for very large feature maps (H*W*Cmid beyond a few MiB) stripe
    # the spatial axis (row stripes with a 1-row halo) to keep blocks VMEM-sized
    # on v7x; at DenseNet/CIFAR sizes the per-image block is tiny.
    N, Cmid, HW = out1.shape
    C = x3.shape[1]
    Cout = w2_mat.shape[0]
    kernel = functools.partial(_bn_relu_conv3x3_concat_kernel, width=width)
    return pl.pallas_call(
        kernel,
        out_shape=jax.ShapeDtypeStruct((N, C + Cout, HW), jnp.float32),
        grid_spec=pltpu.PrefetchScalarGridSpec(
            num_scalar_prefetch=0,
            grid=(N,),
            in_specs=[
                pl.BlockSpec((1, C, HW), lambda n: (n, 0, 0)),
                pl.BlockSpec((1, Cmid, HW), lambda n: (n, 0, 0)),
                pl.BlockSpec((Cmid, 1), lambda n: (0, 0)),
                pl.BlockSpec((Cmid, 1), lambda n: (0, 0)),
                pl.BlockSpec((Cout, 9 * Cmid), lambda n: (0, 0)),
                pl.BlockSpec((9, HW), lambda n: (0, 0)),
            ],
            out_specs=pl.BlockSpec((1, C + Cout, HW), lambda n: (n, 0, 0)),
            scratch_shapes=[pltpu.VMEM((9 * Cmid, HW), jnp.bfloat16)],
        ),
        compiler_params=pltpu.CompilerParams(dimension_semantics=("parallel",)),
    )(x3, out1, scale, bias, w2_mat, tap_mask)


# ---------------------------------------------------------------------------
# Wrapper (Bottleneck.forward) and helpers
# ---------------------------------------------------------------------------
def _make_tap_mask(H, W):
    """(9, H*W) mask: 1.0 where the (dy, dx)-shifted neighbour is in-bounds."""
    y = jnp.arange(H)[:, None]
    x = jnp.arange(W)[None, :]
    rows = []
    for dy in (-1, 0, 1):
        for dx in (-1, 0, 1):
            ok = (y + dy >= 0) & (y + dy < H) & (x + dx >= 0) & (x + dx < W)
            rows.append(ok.reshape(1, H * W))
    return jnp.concatenate(rows, axis=0).astype(jnp.float32)


def bottleneck_forward(x_nchw, params):
    N, C, H, W = x_nchw.shape
    HW = H * W
    Cmid = params["conv1_w"].shape[0]
    Cout = params["conv2_w"].shape[0]

    x3 = x_nchw.reshape(N, C, HW)  # channels-first, free reshape (no transpose)

    # --- BN1 (training-mode batch stats) folded to per-channel scale/bias ----
    # One-pass sum / sum-of-squares formulation: XLA fuses both reductions into
    # a single sweep over x (the centered two-pass form costs an extra HBM read
    # of x).  BN2's stats come from kernel 1's fused per-block moments, so out1
    # is never re-read either.
    cnt1 = float(N * HW)
    s1 = jnp.sum(x3, axis=(0, 2))
    ss1 = jnp.sum(x3 * x3, axis=(0, 2))
    mean1 = s1 / cnt1
    var1 = ss1 / cnt1 - jnp.square(mean1)           # biased (training-mode) variance
    scale1 = params["bn1_gamma"] / jnp.sqrt(var1 + 1.1e-05)   # module spec: eps=1.1e-05
    bias1 = params["bn1_beta"] - mean1 * scale1

    w1 = params["conv1_w"][:, :, 0, 0].astype(jnp.bfloat16)   # (Cmid, C)

    out1, mom = bn_relu_conv1x1(
        x3, scale1.reshape(C, 1).astype(jnp.float32),
        bias1.reshape(C, 1).astype(jnp.float32), w1)

    # --- BN2 stats from the fused kernel-1 moments (no extra pass over out1) --
    tot = jnp.sum(mom, axis=(0, 1))                 # (Cmid, 2)
    cnt2 = float(N * HW)
    mean2 = tot[:, 0] / cnt2
    var2 = tot[:, 1] / cnt2 - jnp.square(mean2)     # biased (training-mode) variance
    scale2 = params["bn2_gamma"] / jnp.sqrt(var2 + 1e-05)
    bias2 = params["bn2_beta"] - mean2 * scale2

    # conv2 weight as (Cout, 9*Cmid), column order = (ky*3+kx)*Cmid + ci
    w2_mat = jnp.transpose(params["conv2_w"], (0, 2, 3, 1)).reshape(Cout, 9 * Cmid)
    w2_mat = w2_mat.astype(jnp.bfloat16)
    tap_mask = _make_tap_mask(H, W)

    # Kernel 2 produces the already-concatenated (N, C+Cout, HW) result: the
    # original x occupies channels [0:C), conv2's output channels [C:C+Cout).
    out_full = bn_relu_conv3x3_concat(
        x3, out1, scale2.reshape(Cmid, 1).astype(jnp.float32),
        bias2.reshape(Cmid, 1).astype(jnp.float32), w2_mat, tap_mask, W)
    return out_full.reshape(N, C + Cout, H, W)      # already NCHW, no transpose


# ---------------------------------------------------------------------------
# Pure-JAX f32 reference (for sanity check)
# ---------------------------------------------------------------------------
def bottleneck_reference(x, params):
    N, C, H, W = x.shape
    g1 = params["bn1_gamma"][None, :, None, None]
    b1 = params["bn1_beta"][None, :, None, None]
    mean1 = x.mean(axis=(0, 2, 3), keepdims=True)
    var1 = jnp.square(x - mean1).mean(axis=(0, 2, 3), keepdims=True)
    a1 = jnp.maximum((x - mean1) / jnp.sqrt(var1 + 1.1e-05) * g1 + b1, 0.0)
    w1 = params["conv1_w"][:, :, 0, 0]
    out1 = jnp.einsum("nchw,dc->ndhw", a1, w1)

    g2 = params["bn2_gamma"][None, :, None, None]
    b2 = params["bn2_beta"][None, :, None, None]
    mean2 = out1.mean(axis=(0, 2, 3), keepdims=True)
    var2 = jnp.square(out1 - mean2).mean(axis=(0, 2, 3), keepdims=True)
    a2 = jnp.maximum((out1 - mean2) / jnp.sqrt(var2 + 1e-05) * g2 + b2, 0.0)

    a2p = jnp.pad(a2, ((0, 0), (0, 0), (1, 1), (1, 1)))
    w2 = params["conv2_w"]
    Cout = w2.shape[0]
    out2 = jnp.zeros((N, Cout, H, W), jnp.float32)
    for ky in range(3):
        for kx in range(3):
            out2 = out2 + jnp.einsum("nchw,dc->ndhw",
                                     a2p[:, :, ky:ky + H, kx:kx + W],
                                     w2[:, :, ky, kx])
    return jnp.concatenate([x, out2], axis=1)


if __name__ == "__main__":
    N, nChannels, H, W = 2, 8, 16, 16
    growthRate = 4
    interChannels = 4 * growthRate

    key = jax.random.PRNGKey(0)
    k_x, k_w1, k_w2 = jax.random.split(key, 3)

    x = jax.random.normal(k_x, (N, nChannels, H, W), dtype=jnp.float32)

    params = {
        # PyTorch BatchNorm2d defaults: weight=1, bias=0
        "bn1_gamma": jnp.ones((nChannels,), jnp.float32),
        "bn1_beta": jnp.zeros((nChannels,), jnp.float32),
        "bn2_gamma": jnp.ones((interChannels,), jnp.float32),
        "bn2_beta": jnp.zeros((interChannels,), jnp.float32),
        # deterministic synthetic conv weights (no bias, as in the module)
        "conv1_w": 0.1 * jax.random.normal(
            k_w1, (interChannels, nChannels, 1, 1), dtype=jnp.float32),
        "conv2_w": 0.1 * jax.random.normal(
            k_w2, (growthRate, interChannels, 3, 3), dtype=jnp.float32),
    }

    out = jax.block_until_ready(bottleneck_forward(x, params))
    ref = bottleneck_reference(x, params)

    assert out.shape == (N, nChannels + growthRate, H, W), out.shape
    # bf16 MXU operands (with f32 accumulation) => loosened tolerance vs the
    # pure-f32 reference.
    max_err = float(jnp.max(jnp.abs(out - ref)))
    assert jnp.allclose(out, ref, atol=5e-2, rtol=5e-2), max_err

    print("KERNEL_OK")
</pallas_src>

<mosaic_0001>
module attributes {stable_mosaic.version = 11 : i64} {
  func.func @_bn_relu_conv1x1_kernel(%arg0: i32, %arg1: i32, %arg2: memref<1x8x256xf32, #tpu.memory_space<vmem>>, %arg3: memref<8x1xf32, #tpu.memory_space<vmem>>, %arg4: memref<8x1xf32, #tpu.memory_space<vmem>>, %arg5: memref<16x8xbf16, #tpu.memory_space<vmem>>, %arg6: memref<1x16x256xf32, #tpu.memory_space<vmem>>, %arg7: memref<1x1x16x2xf32, #tpu.memory_space<vmem>>) attributes {dimension_semantics = [#tpu.dimension_semantics<parallel>, #tpu.dimension_semantics<parallel>], iteration_bounds = array<i64: 2, 1>, scalar_prefetch = 0 : i64, scratch_operands = 0 : i64, tpu.core_type = #tpu.core_type<tc>, window_params = [{transform_indices = @transform_0, window_bounds = array<i64: 1, 8, 256>}, {pipeline_mode = #tpu.pipeline_mode<synchronous>, transform_indices = @transform_1, window_bounds = array<i64: 8, 1>}, {pipeline_mode = #tpu.pipeline_mode<synchronous>, transform_indices = @transform_2, window_bounds = array<i64: 8, 1>}, {pipeline_mode = #tpu.pipeline_mode<synchronous>, transform_indices = @transform_3, window_bounds = array<i64: 16, 8>}, {transform_indices = @transform_4, window_bounds = array<i64: 1, 16, 256>}, {transform_indices = @transform_5, window_bounds = array<i64: 1, 1, 16, 2>}]} {
    %c0 = arith.constant 0 : index
    %c0_0 = arith.constant 0 : index
    %c0_1 = arith.constant 0 : index
    %0 = vector.load %arg2[%c0, %c0_0, %c0_1] : memref<1x8x256xf32, #tpu.memory_space<vmem>>, vector<1x8x256xf32>
    %1 = vector.shape_cast %0 : vector<1x8x256xf32> to vector<8x256xf32>
    %c0_2 = arith.constant 0 : index
    %c0_3 = arith.constant 0 : index
    %2 = vector.load %arg3[%c0_2, %c0_3] : memref<8x1xf32, #tpu.memory_space<vmem>>, vector<8x1xf32>
    %3 = vector.broadcast %2 : vector<8x1xf32> to vector<8x256xf32>
    %4 = arith.mulf %1, %3 : vector<8x256xf32>
    %c0_4 = arith.constant 0 : index
    %c0_5 = arith.constant 0 : index
    %5 = vector.load %arg4[%c0_4, %c0_5] : memref<8x1xf32, #tpu.memory_space<vmem>>, vector<8x1xf32>
    %6 = vector.broadcast %5 : vector<8x1xf32> to vector<8x256xf32>
    %7 = arith.addf %4, %6 : vector<8x256xf32>
    %cst = arith.constant 0.000000e+00 : f32
    %8 = vector.broadcast %cst : f32 to vector<8x256xf32>
    %9 = arith.maximumf %7, %8 : vector<8x256xf32>
    %c0_6 = arith.constant 0 : index
    %c0_7 = arith.constant 0 : index
    %10 = vector.load %arg5[%c0_6, %c0_7] : memref<16x8xbf16, #tpu.memory_space<vmem>>, vector<16x8xbf16>
    %11 = arith.truncf %9 : vector<8x256xf32> to vector<8x256xbf16>
    %cst_8 = arith.constant dense<0.000000e+00> : vector<16x256xf32>
    %12 = tpu.matmul %10, %11, %cst_8 {dimension_numbers = #tpu.dot_dimension_numbers<[1], [0], [0], [1], [0, 0, 1, 1], [], []>} : vector<16x8xbf16>, vector<8x256xbf16>, vector<16x256xf32> -> vector<16x256xf32>
    %c0_9 = arith.constant 0 : index
    %c0_10 = arith.constant 0 : index
    %c0_11 = arith.constant 0 : index
    %13 = vector.load %arg6[%c0_9, %c0_10, %c0_11] : memref<1x16x256xf32, #tpu.memory_space<vmem>>, vector<1x16x256xf32>
    %14 = vector.shape_cast %13 : vector<1x16x256xf32> to vector<16x256xf32>
    %15 = vector.shape_cast %12 : vector<16x256xf32> to vector<1x16x256xf32>
    tpu.vector_store %arg6[%c0_9, %c0_10, %c0_11], %15 {strides = array<i32>} : memref<1x16x256xf32, #tpu.memory_space<vmem>>, vector<1x16x256xf32>,
    %cst_12 = arith.constant dense<0.000000e+00> : vector<16xf32>
    %16 = vector.multi_reduction <add>, %12, %cst_12 [1] : vector<16x256xf32> to vector<16xf32>
    %17 = vector.shape_cast %16 : vector<16xf32> to vector<16x1xf32>
    %c0_13 = arith.constant 0 : index
    %c0_14 = arith.constant 0 : index
    %c0_15 = arith.constant 0 : index
    %c0_16 = arith.constant 0 : index
    %18 = vector.load %arg7[%c0_13, %c0_14, %c0_15, %c0_16] : memref<1x1x16x2xf32, #tpu.memory_space<vmem>>, vector<1x1x16x1xf32>
    %19 = vector.shape_cast %18 : vector<1x1x16x1xf32> to vector<16x1xf32>
    %20 = vector.shape_cast %17 : vector<16x1xf32> to vector<1x1x16x1xf32>
    tpu.vector_store %arg7[%c0_13, %c0_14, %c0_15, %c0_16], %20 {strides = array<i32>} : memref<1x1x16x2xf32, #tpu.memory_space<vmem>>, vector<1x1x16x1xf32>,
    %21 = arith.mulf %12, %12 : vector<16x256xf32>
    %cst_17 = arith.constant dense<0.000000e+00> : vector<16xf32>
    %22 = vector.multi_reduction <add>, %21, %cst_17 [1] : vector<16x256xf32> to vector<16xf32>
    %23 = vector.shape_cast %22 : vector<16xf32> to vector<16x1xf32>
    %c0_18 = arith.constant 0 : index
    %c0_19 = arith.constant 0 : index
    %c0_20 = arith.constant 0 : index
    %c1 = arith.constant 1 : index
    %24 = vector.load %arg7[%c0_18, %c0_19, %c0_20, %c1] : memref<1x1x16x2xf32, #tpu.memory_space<vmem>>, vector<1x1x16x1xf32>
    %25 = vector.shape_cast %24 : vector<1x1x16x1xf32> to vector<16x1xf32>
    %26 = vector.shape_cast %23 : vector<16x1xf32> to vector<1x1x16x1xf32>
    tpu.vector_store %arg7[%c0_18, %c0_19, %c0_20, %c1], %26 {strides = array<i32>} : memref<1x1x16x2xf32, #tpu.memory_space<vmem>>, vector<1x1x16x1xf32>,
    return
  }
  func.func @transform_0(%arg0: i32, %arg1: i32) -> (i32, i32, i32) {
    %c0_i32 = arith.constant 0 : i32
    %c0_i32_0 = arith.constant 0 : i32
    return %arg0, %c0_i32, %arg1 : i32, i32, i32
  }
  func.func @transform_1(%arg0: i32, %arg1: i32) -> (i32, i32) {
    %c0_i32 = arith.constant 0 : i32
    %c0_i32_0 = arith.constant 0 : i32
    %c0_i32_1 = arith.constant 0 : i32
    return %c0_i32, %c0_i32_0 : i32, i32
  }
  func.func @transform_2(%arg0: i32, %arg1: i32) -> (i32, i32) {
    %c0_i32 = arith.constant 0 : i32
    %c0_i32_0 = arith.constant 0 : i32
    %c0_i32_1 = arith.constant 0 : i32
    return %c0_i32, %c0_i32_0 : i32, i32
  }
  func.func @transform_3(%arg0: i32, %arg1: i32) -> (i32, i32) {
    %c0_i32 = arith.constant 0 : i32
    %c0_i32_0 = arith.constant 0 : i32
    %c0_i32_1 = arith.constant 0 : i32
    return %c0_i32, %c0_i32_0 : i32, i32
  }
  func.func @transform_4(%arg0: i32, %arg1: i32) -> (i32, i32, i32) {
    %c0_i32 = arith.constant 0 : i32
    %c0_i32_0 = arith.constant 0 : i32
    return %arg0, %c0_i32, %arg1 : i32, i32, i32
  }
  func.func @transform_5(%arg0: i32, %arg1: i32) -> (i32, i32, i32, i32) {
    %c0_i32 = arith.constant 0 : i32
    %c0_i32_0 = arith.constant 0 : i32
    %c0_i32_1 = arith.constant 0 : i32
    return %arg0, %arg1, %c0_i32, %c0_i32_0 : i32, i32, i32, i32
  }
}

</mosaic_0001>

<bundles_post_ra>
// kernel: tpu_custom_call.1
= control target key start
LH: loop header
LB: loop body
LE: loop exit
PB: predicated region body
PF: predicated region fallthrough
CT: control target
= control target key end

     0   :  { %11 = vsyncpa [#allocation3], 0  ;;  %s948_s0 = inlined_call_operand.hbm [shape: f32[2,8,256], index: 0, kind: input, shape index: {}]   ;;  %s949_s1 = inlined_call_operand.vmem [shape: f32[8,1], index: 1, kind: input, shape index: {}]   ;;  %s950_s2 = inlined_call_operand.vmem [shape: f32[8,1], index: 2, kind: input, shape index: {}]   ;;  %s951_s3 = inlined_call_operand.vmem [shape: bf16[16,8], index: 3, kind: input, shape index: {}]   ;;  %s952_s4 = inlined_call_operand.hbm [shape: f32[2,16,256], index: 4, kind: output, shape index: {0}]   ;;  %s953_s5 = inlined_call_operand.vmem [shape: f32[2,1,16,2], index: 5, kind: output, shape index: {1}]  }
   0x1   :  { %13 = vsyncpa [#allocation3 + $0x1], 0 }
   0x2   :  { %14 = vsyncpa [#allocation4], 0 }
   0x3   :  { %16 = vsyncpa [#allocation4 + $0x1], 0  ;;  %s785_s18 = smov 0   ;;  %s787_s19 = smov 0  }
   0x4   :  { %s789_s20 = smov 0   ;;  %s791_s21 = smov 0  }
   0x5   :  { %s793_s22 = smov 0   ;;  %s795_s23 = smov 0  }
   0x6 LB: > { %s550_s24 = sadd.s32 4294967295, %s748_s23   ;;  %s551_s25 = sadd.s32 4294967294, %s748_s23   ;;  %s748_s23 = sphi %s795_s23, %s22_s23   ;;  %s744_s22 = sphi %s793_s22, %s965_s22   ;;  %s740_s21 = sphi %s791_s21, %s964_s21   ;;  %s736_s20 = sphi %s789_s20, %s963_s20   ;;  %s732_s19 = sphi %s787_s19, %s962_s19   ;;  %s728_s18 = sphi %s785_s18, %s961_s18  }
   0x7   : > { %s34_s26 = sadd.s32 1, %s744_s22  ;;  %s43_s27 = sadd.s32 1, %s736_s20 }
   0x8   : > { %p36_p0 = scmp.ge.s32.totalorder %s34_s26, 2  ;;  %p50_p1 = scmp.ne.s32.totalorder %s736_s20, %s732_s19 }
   0x9   : > { %p51_p2 = scmp.eq.s32.totalorder %s748_s23, 0  ;;  %p56_p3 = scmp.ne.s32.totalorder %s732_s19, %s728_s18 }
   0xa   : > { %s967_s26 = smov (%p36_p0, %s34_s26), 0  ;;  %p57_p5 = scmp.eq.s32.totalorder %s550_s24, 0 }
   0xb   : > { %p826_p4 = por %p51_p2, %p50_p1  ;;  %s38_s29 = ssub.s32 %s744_s22, %s967_s26 }
   0xc   : > { %p145_p6 = scmp.eq.s32.totalorder %s550_s24, 1  ;;  %p41_p7 = scmp.eq.s32.totalorder %s38_s29, 0 }
   0xd   : > { %p832_p8 = por %p57_p5, %p56_p3  ;;  %p151_p10 = scmp.eq.s32.totalorder %s551_s25, 1 }
   0xe   : > { %p836_p9 = por %p145_p6, %p50_p1  ;;  %p585_p13 = scmp.lt.s32.totalorder %s748_s23, 2 }
   0xf   : > { %s841_s7 = scalar_select %p41_p7, %s736_s20, %s43_s27  }
  0x10   : > { %p843_p11 = por %p151_p10, %p56_p3  ;;  %s208_s9 = sand.u32 1, %s736_s20  }
  0x11   : > { %s554_s10 = sshll.u32 %s208_s9, 4  ;;  %s570_s11 = sshll.u32 %s744_s22, 8 }
  0x12   : > { %s957_s8 = scalar_select %p843_p11, 1, 0 }
  0x13   : > { %s220_s14 = scalar_lea.hbm %s948_s0, %s570_s11  ;;  %s212_s15 = scalar_lea.vmem [#allocation2], %s554_s10 }
  0x14   : > { %s222_s16 = sshll.u32 %s212_s15, 4  ;;  %p856_p0 = pnand %p585_p13, %p826_p4  ;;  %s223_s16 = int_to_ptr.vmem [resolvable:$true] %s222_s16 }
  0x15   : > { %p557_p1 = scmp.ge.s32.totalorder %s748_s23, 1  ;;  %p227_p2 = scmp.lt.s32.totalorder %s748_s23, 3 }
  0x16   : > { %s209_s24 = scalar_lea.sflag [#allocation3], %s208_s9  ;;  %p642_p3 = pneg %p856_p0 }
  0x17   : > { %s653_s25 = scalar_lea.vmem %s223_s16, 256  ;;  %s750_s27 = smov [#allocation2]  }
  0x18   : > { %p654_p5 = scmp.ne.s32.totalorder %s223_s16, %s653_s25  ;;  %s658_s29 = sshll.u32 %s750_s27, 4  ;;  %s659_s29 = int_to_ptr.vmem [resolvable:$false] %s658_s29 }
  0x19   : > { %s660_s10 = scalar_lea.vmem %s659_s29, 512  ;;  %p661_p10 = scmp.lt.s32.totalorder %s223_s16, %s659_s29 }
  0x1a   : > { %p656_p6 = pnand %p654_p5, %p642_p3  ;;  %p662_p12 = scmp.lt.s32.totalorder %s660_s10, %s653_s25 }
  0x1c   : > { %p657_p7 = pneg %p656_p6  ;;  %p663_p4 = por %p662_p12, %p661_p10 }
  0x1e   : > { %p664_p13 = pnand %p663_p4, %p657_p7 }
  0x20   : > { %667 = shalt.err (!%p664_p13)
}
  0x21   : > { %580 = dma.hbm_to_vmem [thread:$0]  (!%p856_p0), %s220_s14, 256, %s223_s16, %s209_s24  }
  0x22   : > { %p228_p11 = pnand %p557_p1, %p227_p2 }
  0x23   : > { %s871_s28 = sand.u32 (!%p228_p11), 1, %s732_s19  }
  0x24   : > { %231 = sbr.rel (%p228_p11) target bundleno = 526 (0x20e), region = 36  ;;  %s558_s9 = sshll.u32 (!%p228_p11), %s871_s28, 4 }
  0x25   : > { %s234_s11 = scalar_lea.sflag (!%p228_p11), [#allocation3], %s871_s28  ;;  %s237_s12 = scalar_lea.vmem (!%p228_p11), [#allocation2], %s558_s9 }
  0x29   : > { %719 = dma.done.wait (%p832_p8), %s234_s11, 256  }
  0x2a   : > { %721 = vsyncadd (%p832_p8), %s234_s11, 4294967040  ;;  %v751_v0 = vmov 0   ;;  %v287_v1 = vld [vmem:[%s949_s1] sm:$0xff]  ;;  %v286_v5 = vld [vmem:[%s237_s12 + $0x8] sm:$0xff]  ;;  %vm318_vm0 = vcmask 1043456   ;;  %vm314_vm1 = vcmask 64512  }
  0x2b   : > { %638 = vset.pattern.permute.xlu0 %v751_v0  ;;  %357 = vmatprep.mubr.bf16.mxu0 %v751_v0  ;;  %v295_v2 = vld [vmem:[%s950_s2] sm:$0xff]  ;;  %s559_s24 = sshll.u32 %s871_s28, 5  ;;  %s572_s29 = sshll.u32 %s740_s21, 9 }
  0x2c   : > { %290 = vperm.xlu0 %638, %v287_v1   ;;  %v285_v4 = vld [vmem:[%s237_s12] sm:$0xff]  ;;  %s261_s25 = scalar_lea.vmem [#allocation5], %s559_s24  ;;  %s895_s11 = scalar_lea.hbm %s952_s4, %s572_s29 }
  0x2d   : > { %v639_v16 = vld [vmem:[%s951_s3] sm:$0xff]   ;;  %s419_s27 = sshll.u32 %s261_s25, 4  ;;  %s395_s12 = scalar_lea.sflag [#allocation4], %s871_s28  ;;  %s889_s27 = int_to_ptr.vmem [resolvable:$true] %s419_s27 }
  0x2e   : > { %s668_s13 = scalar_lea.vmem %s889_s27, 512  ;;  %s752_s14 = smov [#allocation5]  }
  0x2f   : > { %p669_p8 = scmp.ne.s32.totalorder %s889_s27, %s668_s13  ;;  %s672_s15 = sshll.u32 %s752_s14, 4  ;;  %s673_s15 = int_to_ptr.vmem [resolvable:$false] %s672_s15 }
  0x30   : > { %298 = vperm.xlu0 %638, %v295_v2   ;;  %s674_s16 = scalar_lea.vmem %s673_s15, 1024  ;;  %p675_p0 = scmp.lt.s32.totalorder %s889_s27, %s673_s15 }
  0x31   : > { %p670_p11 = pnand %p669_p8, %p836_p9  ;;  %p676_p1 = scmp.lt.s32.totalorder %s674_s16, %s668_s13 }
  0x33   : > { %p671_p12 = pneg %p670_p11  ;;  %p677_p2 = por %p676_p1, %p675_p0 }
  0x35   : > { %p678_p3 = pnand %p677_p2, %p671_p12 }
  0xa7   : > { %v291_v3 = vpop.permute.xlu0 %290 }
  0xa8   : > { %v293_v6 = vmul.f32 %v291_v3, %v285_v4  ;;  %v294_v7 = vmul.f32 %v291_v3, %v286_v5 }
  0xab   : > { %v299_v8 = vpop.permute.xlu0 %298 }
  0xac   : > { %v301_v9 = vadd.f32 %v299_v8, %v293_v6  ;;  %v302_v10 = vadd.f32 %v299_v8, %v294_v7 }
  0xae   : > { %v303_v11 = vmax.f32 %v301_v9, 0.0  ;;  %v304_v12 = vmax.f32 %v302_v10, 0.0 }
  0xb0   : > { %v308_v13 = vpack.c.bf16 %v304_v12, %v304_v12  ;;  %v307_v14 = vpack.c.bf16 %v303_v11, %v303_v11 }
  0xb2   : > { %563 = vmatprep.subr.msk.bf16.mxu0 %vm318_vm0, %v308_v13  ;;  %v320_v15 = vsel %vm318_vm0, %v307_v14, 0 }
  0xb3   : > { %340 = vmatpush1.bf16.msra.mxu0 %v320_v15 }
  0xb6   : > { %564 = vmatmul.mubr.msk.bf16.vlgmr.msra.gmra.mxu0 %vm314_vm1, %v639_v16 }
 0x176   : > { %v359_v17 = vpop.f32.mrf.mxu0 }
 0x177   : > { %368 = vst [vmem:[%s261_s25] sm:$0xff] %v359_v17  ;;  %v381_v20 = vmul.f32 %v359_v17, %v359_v17 }
 0x178   : > { %v361_v18 = vpop.f32.mrf.mxu0 }
 0x179   : > { %369 = vst [vmem:[%s261_s25 + $0x8] sm:$0xff] %v361_v18  ;;  %v372_v19 = vadd.f32 %v361_v18, %v359_v17  ;;  %v382_v21 = vmul.f32 %v361_v18, %v361_v18 }
 0x17a   : > { %v363_v22 = vpop.f32.mrf.mxu0 }
 0x17b   : > { %370 = vst [vmem:[%s261_s25 + $0x10] sm:$0xff] %v363_v22  ;;  %373 = vadd.xlane.f32.xlu1 %v372_v19  ;;  %v385_v23 = vadd.f32 %v382_v21, %v381_v20  ;;  %v383_v27 = vmul.f32 %v363_v22, %v363_v22 }
 0x17c   : > { %v365_v24 = vpop.f32.mrf.mxu0 }
 0x17d   : > { %371 = vst [vmem:[%s261_s25 + $0x18] sm:$0xff] %v365_v24  ;;  %v384_v25 = vmul.f32 %v365_v24, %v365_v24  ;;  %386 = vadd.xlane.f32.xlu0 %v385_v23  ;;  %v375_v26 = vadd.f32 %v365_v24, %v363_v22 }
 0x17f   : > { %376 = vadd.xlane.f32.xlu1 %v375_v26  ;;  %v388_v28 = vadd.f32 %v384_v25, %v383_v27 }
 0x183   : > { %389 = vadd.xlane.f32.xlu1 %v388_v28 }
 0x184   : > { %681 = shalt.err (!%p678_p3)
}
 0x185   : > { %s682_s30 = scalar_lea.hbm %s895_s11, 512  ;;  %s686_s25 = scalar_lea.hbm %s952_s4, 1024 }
 0x186   : > { %p683_p5 = scmp.ne.s32.totalorder %s895_s11, %s682_s30  ;;  %p687_p10 = scmp.lt.s32.totalorder %s895_s11, %s952_s4 }
 0x187   : > { %p688_p4 = scmp.lt.s32.totalorder %s686_s25, %s682_s30 }
 0x188   : > { %p684_p6 = pnand %p683_p5, %p836_p9 }
 0x189   : > { %p689_p13 = por %p688_p4, %p687_p10 }
 0x18a   : > { %p685_p7 = pneg %p684_p6 }
 0x18c   : > { %p690_p8 = pnand %p689_p13, %p685_p7 }
 0x18e   : > { %693 = shalt.err (!%p690_p8)
}
 0x18f   : > { %s753_s9 = smov 256   ;;  %s754_s13 = smov 16   ;;  %vm378_vm2 = vcmask 7168   ;;  %vm391_vm3 = vcmask 15368  }
 0x190   : > { %575 = dma.vmem_to_hbm [thread:$0]  (%p836_p9), %s889_s27, 512, %s895_s11, %s395_s12, %s753_s9, %s753_s9, %s754_s13  }
 0x191   : > { %p275_p11 = scmp.lt.s32.totalorder %s740_s21, 1 }
 0x193   : > { %s969_s21 = smov (!%p275_p11, %s740_s21), 1 }
 0x194   : > { %s571_s14 = sshll.u32 %s969_s21, 4 }
 0x195   : > { %s283_s30 = scalar_lea.vmem %s953_s5, %s571_s14 }
 0x204   : > { %v374_v29 = vpop.xlane.xlu1 %373 }
 0x205   : > { %379 = vst.msk [vmem:[%s283_s30] sm:$0xff] %vm378_vm2, %v374_v29 }
 0x206   : > { %v387_v30 = vpop.xlane.xlu0 %386 }
 0x207   : > { %392 = vst.msk [vmem:[%s283_s30] sm:$0xff] %vm391_vm3, %v387_v30 }
 0x208   : > { %v377_v31 = vpop.xlane.xlu1 %376 }
 0x209   : > { %380 = vst.msk [vmem:[%s283_s30 + $0x8] sm:$0xff] %vm378_vm2, %v377_v31 }
 0x20c   : > { %v390_v32 = vpop.xlane.xlu1 %389 }
 0x20d   : > { %393 = vst.msk [vmem:[%s283_s30 + $0x8] sm:$0xff] %vm391_vm3, %v390_v32 }
 0x20e PF: > { %s437_s6 = sand.u32 1, %s728_s18   ;;  %p959_p9 = scmp.ne.s32.totalorder %s957_s8, 0 }
 0x20f   : > { %p960_p12 = scmp.ge.s32.totalorder %s748_s23, 2  ;;  %s438_s21 = scalar_lea.sflag [#allocation4], %s437_s6 }
 0x211   : > { %p582_p0 = pnand %p960_p12, %p959_p9 }
 0x213   : > { %p583_p1 = pneg %p582_p0 }
 0x215   : > { %723 = dma.done.wait (%p583_p1), %s438_s21, 512  }
 0x216   : > { %725 = vsyncadd (%p583_p1), %s438_s21, 4294966784  ;;  %s22_s23 = sadd.s32 1, %s748_s23   ;;  %s961_s18 = smov %s732_s19 }
 0x217   : > { %p19_p2 = scmp.ge.s32.totalorder %s22_s23, 4   ;;  %s962_s19 = smov %s736_s20 }
 0x218   : > { %s963_s20 = smov %s841_s7  ;;  %s964_s21 = smov %s744_s22 }
 0x219   : > { %s965_s22 = smov %s967_s26  ;;  %21 = sbr.rel (!%p19_p2) target bundleno = 6 (0x6), region = 93 }
 0x21e   :  { %455 = vsyncpa [#allocation3], 1 }
 0x21f   :  { %457 = vsyncpa [#allocation3 + $0x1], 1 }
 0x220   :  { %458 = vsyncpa [#allocation4], 1 }
 0x221   :  { %460 = vsyncpa [#allocation4 + $0x1], 1 }

</bundles_post_ra>
